<compile_context>
chip_gen: v6e
topology: v6e:2x2x1
jax: 0.10.0
libtpu: 0.0.40
codegen_flags: <defaults>
</compile_context>

<pallas_src>
import jax
import jax.numpy as jnp
from jax.experimental import pallas as pl
from jax.experimental.pallas import tpu as pltpu


def _detection_kernel(add_ref, mul_ref, x_ref, o_ref):
    """Decode one (bB, nA, attrs, nGsq) slab with a single unmasked store.

    add_ref: VMEM (attrs, nGsq)  per-(row, cell) additive offset:
             row 0 = gx*stride, row 1 = gy*stride, rows 2.. = 0.
    mul_ref: VMEM (nA, attrs, 1) per-(anchor, row) scale:
             rows 0,1 = stride; rows 2,3 = anchor_w, anchor_h (pixels);
             rows 4.. = 1.
    x_ref:   VMEM (bB, nA, attrs, nGsq) raw predictions.
    o_ref:   VMEM (bB, nA, attrs, nGsq) decoded predictions:
             rows 0..3 = box (x, y, w, h) in pixels, row 4 = sigmoid(conf),
             rows 5..  = sigmoid(cls).
    """
    x = x_ref[...].astype(jnp.float32)
    # Whole-slab sigmoid AND exp (EUP has huge slack at the HBM roofline);
    # a per-row where-select keeps everything in full vregs and lets the
    # result go out as ONE unmasked full-slab store.
    s = jax.nn.sigmoid(x)
    e = jnp.exp(x)
    row = jax.lax.broadcasted_iota(jnp.int32, x.shape, 2)      # attrs axis
    is_wh = jnp.logical_and(row >= 2, row < 4)                 # tw, th rows
    # rows 0,1: sigmoid*stride + cell_offset*stride
    # rows 2,3: exp * anchor_size_px
    # rows 4+ : sigmoid
    o_ref[...] = (jnp.where(is_wh, e, s) * mul_ref[...] + add_ref[...]).astype(
        o_ref.dtype
    )


def detection_layer_forward(x, anchors, num_classes, img_dim, *, return_slab=False):
    """Inference path of DetectionLayer.forward (targets=None).

    x: (nB, nA*(5+num_classes), nG, nG)
    returns: (nB, nA*nG*nG, 5+num_classes) float32  (PyTorch layout), or the
             raw (nB, nA, attrs, nG*nG) float32 slab if return_slab=True
             (saves a full extra HBM round trip for slab-aware consumers).
    """
    nB, C, nG, nG2 = x.shape
    assert nG == nG2
    nA = len(anchors)
    attrs = 5 + num_classes
    assert C == nA * attrs
    stride = float(img_dim) / float(nG)
    nGsq = nG * nG

    # (nB, nA*attrs, nG, nG) -> (nB, nA, attrs, nGsq); contiguous => free.
    # No lane padding: BlockSpec last dim = full extent nGsq.
    # TODO(synk): if the producer feeds bf16, keep bf16 I/O end-to-end (the
    # kernel upcasts internally) for a ~2x bandwidth win; f32 kept here to
    # match the PyTorch module's numerics.
    xr = x.reshape(nB, nA, attrs, nGsq)

    # Host-precomputed decode tables (VMEM-resident via constant index_maps).
    idx = jnp.arange(nGsq, dtype=jnp.int32)
    gx = (idx % nG).astype(jnp.float32) * stride
    gy = (idx // nG).astype(jnp.float32) * stride
    add_tab = jnp.zeros((attrs, nGsq), jnp.float32).at[0].set(gx).at[1].set(gy)

    a = jnp.asarray(anchors, dtype=jnp.float32).reshape(nA, 2)      # pixels
    mul_tab = jnp.ones((nA, attrs), jnp.float32)
    mul_tab = mul_tab.at[:, 0].set(stride).at[:, 1].set(stride)
    mul_tab = mul_tab.at[:, 2].set(a[:, 0]).at[:, 3].set(a[:, 1])   # a/stride*stride
    mul_tab = mul_tab.reshape(nA, attrs, 1)

    # Block sizing: ~6 MiB of input per step (amortizes the ~0.35 us per-step
    # pipeline overhead on all generations), ragged last block via cdiv, and
    # >=2 grid steps whenever nB >= 2 so v7x's two TensorCores both run.
    itemsize = jnp.dtype(x.dtype).itemsize
    per_batch_in = nA * attrs * nGsq * itemsize
    bB = max(1, min(nB, (6 << 20) // max(per_batch_in, 1)))
    if nB >= 2:
        bB = min(bB, max(1, nB // 2))
    num_steps = pl.cdiv(nB, bB)

    in_block = bB * nA * attrs * nGsq * itemsize
    out_block = bB * nA * attrs * nGsq * 4
    const_bytes = (attrs * nGsq + nA * attrs) * 4
    vmem_limit = 2 * (in_block + out_block + const_bytes) + (4 << 20)
    vmem_limit = int(min(max(vmem_limit, 16 << 20), 64 << 20))

    out = pl.pallas_call(
        _detection_kernel,
        out_shape=jax.ShapeDtypeStruct((nB, nA, attrs, nGsq), jnp.float32),
        grid=(num_steps,),
        in_specs=[
            pl.BlockSpec((attrs, nGsq), lambda b: (0, 0)),      # resident offsets
            pl.BlockSpec((nA, attrs, 1), lambda b: (0, 0, 0)),  # resident scales
            pl.BlockSpec((bB, nA, attrs, nGsq), lambda b: (b, 0, 0, 0)),
        ],
        out_specs=pl.BlockSpec((bB, nA, attrs, nGsq), lambda b: (b, 0, 0, 0)),
        compiler_params=pltpu.CompilerParams(
            dimension_semantics=("parallel",),  # no cross-step carry
            vmem_limit_bytes=vmem_limit,
        ),
    )(add_tab, mul_tab, xr)

    if return_slab:
        return out
    # PyTorch output layout.
    # TODO(synk): this relayout is a full extra HBM round trip; fuse it into
    # the downstream score-filter/NMS kernel or call with return_slab=True.
    return out.transpose(0, 1, 3, 2).reshape(nB, nA * nGsq, attrs)


def _reference_forward(x, anchors, num_classes, img_dim):
    """Pure-JAX replica of the PyTorch forward (targets=None) for validation."""
    nB, C, nG, _ = x.shape
    nA = len(anchors)
    attrs = 5 + num_classes
    stride = float(img_dim) / float(nG)
    pred = x.reshape(nB, nA, attrs, nG, nG).transpose(0, 1, 3, 4, 2)
    tx = jax.nn.sigmoid(pred[..., 0])
    ty = jax.nn.sigmoid(pred[..., 1])
    tw = pred[..., 2]
    th = pred[..., 3]
    conf = jax.nn.sigmoid(pred[..., 4])
    cls = jax.nn.sigmoid(pred[..., 5:])
    gx = jnp.tile(jnp.arange(nG, dtype=jnp.float32), (nG, 1)).reshape(1, 1, nG, nG)
    gy = jnp.tile(jnp.arange(nG, dtype=jnp.float32), (nG, 1)).T.reshape(1, 1, nG, nG)
    scaled = jnp.array([(aw / stride, ah / stride) for aw, ah in anchors], jnp.float32)
    aw = scaled[:, 0].reshape(1, nA, 1, 1)
    ah = scaled[:, 1].reshape(1, nA, 1, 1)
    boxes = jnp.stack(
        [tx + gx, ty + gy, jnp.exp(tw) * aw, jnp.exp(th) * ah], axis=-1
    )
    return jnp.concatenate(
        [
            boxes.reshape(nB, -1, 4) * stride,
            conf.reshape(nB, -1, 1),
            cls.reshape(nB, -1, num_classes),
        ],
        axis=-1,
    )


if __name__ == "__main__":
    # Small, deterministic config consistent with the module.
    anchors = [(10.0, 13.0), (16.0, 30.0), (33.0, 23.0)]
    num_classes = 3                      # attrs = 5 + 3 = 8
    img_dim = 64
    nB, nA, nG = 2, len(anchors), 16
    attrs = 5 + num_classes

    key = jax.random.PRNGKey(0)
    x = jax.random.normal(key, (nB, nA * attrs, nG, nG), dtype=jnp.float32)

    out = detection_layer_forward(x, anchors, num_classes, img_dim)
    out = jax.block_until_ready(out)

    ref = _reference_forward(x, anchors, num_classes, img_dim)
    assert out.shape == (nB, nA * nG * nG, attrs), out.shape
    assert jnp.allclose(out, ref, atol=1e-5, rtol=1e-5), "mismatch vs reference"

    # Slab path (no output relayout) must match too.
    slab = detection_layer_forward(x, anchors, num_classes, img_dim, return_slab=True)
    slab = jax.block_until_ready(slab)
    assert jnp.allclose(
        slab.transpose(0, 1, 3, 2).reshape(nB, nA * nG * nG, attrs),
        ref, atol=1e-5, rtol=1e-5,
    ), "slab mismatch vs reference"

    # TODO(synk): training branch (build_targets + masked MSE/BCE/CE losses) is
    # data-dependent host-side logic in the original; not implemented here.
    print("KERNEL_OK")
</pallas_src>

<mosaic_0001>
module attributes {stable_mosaic.version = 11 : i64} {
  func.func @_detection_kernel(%arg0: i32, %arg1: memref<8x256xf32, #tpu.memory_space<vmem>>, %arg2: memref<3x8x1xf32, #tpu.memory_space<vmem>>, %arg3: memref<1x3x8x256xf32, #tpu.memory_space<vmem>>, %arg4: memref<1x3x8x256xf32, #tpu.memory_space<vmem>>) attributes {dimension_semantics = [#tpu.dimension_semantics<parallel>], iteration_bounds = array<i64: 2>, scalar_prefetch = 0 : i64, scratch_operands = 0 : i64, tpu.core_type = #tpu.core_type<tc>, window_params = [{pipeline_mode = #tpu.pipeline_mode<synchronous>, transform_indices = @transform_0, window_bounds = array<i64: 8, 256>}, {pipeline_mode = #tpu.pipeline_mode<synchronous>, transform_indices = @transform_1, window_bounds = array<i64: 3, 8, 1>}, {transform_indices = @transform_2, window_bounds = array<i64: 1, 3, 8, 256>}, {transform_indices = @transform_3, window_bounds = array<i64: 1, 3, 8, 256>}]} {
    %c0 = arith.constant 0 : index
    %c0_0 = arith.constant 0 : index
    %c0_1 = arith.constant 0 : index
    %c0_2 = arith.constant 0 : index
    %0 = vector.load %arg3[%c0, %c0_0, %c0_1, %c0_2] : memref<1x3x8x256xf32, #tpu.memory_space<vmem>>, vector<1x3x8x256xf32>
    %1 = arith.negf %0 : vector<1x3x8x256xf32>
    %2 = math.exp %1 : vector<1x3x8x256xf32>
    %cst = arith.constant 1.000000e+00 : f32
    %3 = vector.broadcast %cst : f32 to vector<1x3x8x256xf32>
    %4 = arith.addf %3, %2 : vector<1x3x8x256xf32>
    %5 = arith.divf %3, %4 : vector<1x3x8x256xf32>
    %6 = math.exp %0 : vector<1x3x8x256xf32>
    %7 = tpu.iota {dimensions = array<i32: 2>} : vector<1x3x8x256xi32>
    %c2_i32 = arith.constant 2 : i32
    %8 = vector.broadcast %c2_i32 : i32 to vector<1x3x8x256xi32>
    %9 = arith.cmpi sge, %7, %8 : vector<1x3x8x256xi32>
    %c4_i32 = arith.constant 4 : i32
    %10 = vector.broadcast %c4_i32 : i32 to vector<1x3x8x256xi32>
    %11 = arith.cmpi slt, %7, %10 : vector<1x3x8x256xi32>
    %12 = arith.andi %9, %11 : vector<1x3x8x256xi1>
    %13 = arith.select %12, %6, %5 : vector<1x3x8x256xi1>, vector<1x3x8x256xf32>
    %c0_3 = arith.constant 0 : index
    %c0_4 = arith.constant 0 : index
    %c0_5 = arith.constant 0 : index
    %14 = vector.load %arg2[%c0_3, %c0_4, %c0_5] : memref<3x8x1xf32, #tpu.memory_space<vmem>>, vector<3x8x1xf32>
    %15 = vector.shape_cast %14 : vector<3x8x1xf32> to vector<1x3x8x1xf32>
    %16 = vector.broadcast %15 : vector<1x3x8x1xf32> to vector<1x3x8x256xf32>
    %17 = arith.mulf %13, %16 : vector<1x3x8x256xf32>
    %c0_6 = arith.constant 0 : index
    %c0_7 = arith.constant 0 : index
    %18 = vector.load %arg1[%c0_6, %c0_7] : memref<8x256xf32, #tpu.memory_space<vmem>>, vector<8x256xf32>
    %19 = vector.shape_cast %18 : vector<8x256xf32> to vector<1x1x8x256xf32>
    %20 = vector.broadcast %19 : vector<1x1x8x256xf32> to vector<1x3x8x256xf32>
    %21 = arith.addf %17, %20 : vector<1x3x8x256xf32>
    %c0_8 = arith.constant 0 : index
    %c0_9 = arith.constant 0 : index
    %c0_10 = arith.constant 0 : index
    %c0_11 = arith.constant 0 : index
    %22 = vector.load %arg4[%c0_8, %c0_9, %c0_10, %c0_11] : memref<1x3x8x256xf32, #tpu.memory_space<vmem>>, vector<1x3x8x256xf32>
    tpu.vector_store %arg4[%c0_8, %c0_9, %c0_10, %c0_11], %21 {strides = array<i32>} : memref<1x3x8x256xf32, #tpu.memory_space<vmem>>, vector<1x3x8x256xf32>,
    return
  }
  func.func @transform_0(%arg0: i32) -> (i32, i32) {
    %c0_i32 = arith.constant 0 : i32
    %c0_i32_0 = arith.constant 0 : i32
    %c0_i32_1 = arith.constant 0 : i32
    return %c0_i32, %c0_i32_0 : i32, i32
  }
  func.func @transform_1(%arg0: i32) -> (i32, i32, i32) {
    %c0_i32 = arith.constant 0 : i32
    %c0_i32_0 = arith.constant 0 : i32
    %c0_i32_1 = arith.constant 0 : i32
    %c0_i32_2 = arith.constant 0 : i32
    return %c0_i32, %c0_i32_0, %c0_i32_1 : i32, i32, i32
  }
  func.func @transform_2(%arg0: i32) -> (i32, i32, i32, i32) {
    %c0_i32 = arith.constant 0 : i32
    %c0_i32_0 = arith.constant 0 : i32
    %c0_i32_1 = arith.constant 0 : i32
    %c0_i32_2 = arith.constant 0 : i32
    return %arg0, %c0_i32, %c0_i32_0, %c0_i32_1 : i32, i32, i32, i32
  }
  func.func @transform_3(%arg0: i32) -> (i32, i32, i32, i32) {
    %c0_i32 = arith.constant 0 : i32
    %c0_i32_0 = arith.constant 0 : i32
    %c0_i32_1 = arith.constant 0 : i32
    %c0_i32_2 = arith.constant 0 : i32
    return %arg0, %c0_i32, %c0_i32_0, %c0_i32_1 : i32, i32, i32, i32
  }
}

</mosaic_0001>

<bundles_post_ra>
// kernel: tpu_custom_call.1
= control target key start
LH: loop header
LB: loop body
LE: loop exit
PB: predicated region body
PF: predicated region fallthrough
CT: control target
= control target key end

     0   :  { %8 = vsyncpa [#allocation3], 0  ;;  %s790_s0 = inlined_call_operand.vmem [shape: f32[8,256], index: 0, kind: input, shape index: {}]   ;;  %s791_s1 = inlined_call_operand.vmem [shape: f32[3,8,1], index: 1, kind: input, shape index: {}]   ;;  %s792_s2 = inlined_call_operand.hbm [shape: f32[2,3,8,256], index: 2, kind: input, shape index: {}]   ;;  %s793_s3 = inlined_call_operand.hbm [shape: f32[2,3,8,256], index: 3, kind: output, shape index: {}]  }
   0x1   :  { %10 = vsyncpa [#allocation3 + $0x1], 0 }
   0x2   :  { %11 = vsyncpa [#allocation4], 0 }
   0x3   :  { %13 = vsyncpa [#allocation4 + $0x1], 0  ;;  %s607_s12 = smov 0   ;;  %s609_s13 = smov 0  }
   0x4   :  { %s611_s14 = smov 0   ;;  %s613_s15 = smov 0  }
   0x5 LB: > { %s628_s16 = sadd.s32 4294967295, %s578_s15   ;;  %s379_s17 = sadd.s32 4294967294, %s578_s15   ;;  %s578_s15 = sphi %s613_s15, %s809_s15   ;;  %s574_s14 = sphi %s611_s14, %s808_s14   ;;  %s570_s13 = sphi %s609_s13, %s807_s13   ;;  %s566_s12 = sphi %s607_s12, %s806_s12  }
   0x6   : > { %s632_s18 = sadd.s32 1, %s578_s15   ;;  %s68_s19 = sadd.s32 1, %s574_s14 }
   0x7   : > { %s65_s20 = ssub.s32 %s578_s15, %s632_s18  ;;  %p75_p0 = scmp.ne.s32.totalorder %s574_s14, %s570_s13 }
   0x8   : > { %p66_p1 = scmp.eq.s32.totalorder %s65_s20, 0  ;;  %p76_p2 = scmp.eq.s32.totalorder %s578_s15, 0 }
   0x9   : > { %p81_p3 = scmp.ne.s32.totalorder %s570_s13, %s566_s12  ;;  %p82_p4 = scmp.eq.s32.totalorder %s628_s16, 0 }
   0xa   : > { %s644_s21 = scalar_select %p66_p1, %s574_s14, %s68_s19  }
   0xb   : > { %p77_p5 = por %p76_p2, %p75_p0  ;;  %p646_p6 = por %p82_p4, %p81_p3 }
   0xc   : > { %p105_p7 = scmp.eq.s32.totalorder %s628_s16, 1  ;;  %p111_p8 = scmp.eq.s32.totalorder %s379_s17, 1 }
   0xd   : > { %s796_s22 = scalar_select %p646_p6, 1, 0 }
   0xe   : > { %p409_p10 = scmp.lt.s32.totalorder %s578_s15, 2  ;;  %p653_p11 = por %p105_p7, %p75_p0 }
   0xf   : > { %p657_p12 = por %p111_p8, %p81_p3  ;;  %s137_s25 = sand.u32 1, %s574_s14  }
  0x10   : > { %s797_s23 = scalar_select %p653_p11, 1, 0 }
  0x11   : > { %s798_s24 = scalar_select %p657_p12, 1, 0 }
  0x12   : > { %s394_s26 = smul.u32 768, %s578_s15  ;;  %p668_p13 = pnand %p409_p10, %p77_p5 }
  0x13   : > { %s393_s27 = smul.u32 48, %s137_s25  ;;  %s674_s7 = scalar_lea.sflag [#allocation3], %s137_s25 }
  0x14   : > { %s666_s30 = scalar_lea.hbm %s792_s2, %s394_s26  ;;  %p488_p1 = pneg %p668_p13 }
  0x15   : > { %s141_s5 = scalar_lea.vmem [#allocation2], %s393_s27  ;;  %s486_s8 = scalar_lea.hbm %s666_s30, 768 }
  0x16   : > { %s148_s6 = sshll.u32 %s141_s5, 4  ;;  %p487_p0 = scmp.ne.s32.totalorder %s666_s30, %s486_s8  ;;  %s672_s6 = int_to_ptr.vmem [resolvable:$true] %s148_s6 }
  0x17   : > { %s491_s11 = scalar_lea.hbm %s792_s2, 1536  ;;  %p492_p4 = scmp.lt.s32.totalorder %s666_s30, %s792_s2 }
  0x18   : > { %p489_p2 = pnand %p488_p1, %p487_p0  ;;  %p493_p5 = scmp.lt.s32.totalorder %s491_s11, %s486_s8 }
  0x1a   : > { %p490_p3 = pneg %p489_p2  ;;  %p494_p7 = por %p493_p5, %p492_p4 }
  0x1c   : > { %p495_p8 = pnand %p494_p7, %p490_p3 }
  0x1e   : > { %498 = shalt.err (!%p495_p8)
}
  0x1f   : > { %s499_s20 = scalar_lea.vmem %s672_s6, 768  ;;  %s580_s25 = smov [#allocation2]  }
  0x20   : > { %p500_p10 = scmp.ne.s32.totalorder %s672_s6, %s499_s20  ;;  %s504_s26 = sshll.u32 %s580_s25, 4  ;;  %s505_s26 = int_to_ptr.vmem [resolvable:$false] %s504_s26 }
  0x21   : > { %s506_s27 = scalar_lea.vmem %s505_s26, 1536  ;;  %p507_p2 = scmp.lt.s32.totalorder %s672_s6, %s505_s26 }
  0x22   : > { %p502_p9 = pnand %p500_p10, %p488_p1  ;;  %p508_p12 = scmp.lt.s32.totalorder %s506_s27, %s499_s20 }
  0x24   : > { %p503_p0 = pneg %p502_p9  ;;  %p509_p11 = por %p508_p12, %p507_p2 }
  0x26   : > { %p510_p6 = pnand %p509_p11, %p503_p0 }
  0x28   : > { %513 = shalt.err (!%p510_p6)
}
  0x29   : > { %s581_s28 = smov 256   ;;  %s582_s29 = smov 16  }
  0x2a   : > { %404 = dma.hbm_to_vmem [thread:$0]  (!%p668_p13), %s666_s30, 768, %s672_s6, %s674_s7, %s581_s28, %s581_s28, %s582_s29  }
  0x2b   : > { %p383_p9 = scmp.ge.s32.totalorder %s578_s15, 1  ;;  %p156_p1 = scmp.lt.s32.totalorder %s578_s15, 3 }
  0x2d   : > { %p157_p3 = pnand %p383_p9, %p156_p1 }
  0x2e   : > { %s698_s5 = sand.u32 (!%p157_p3), 1, %s570_s13   ;;  %p800_p6 = scmp.ne.s32.totalorder (!%p157_p3), %s796_s22, 0 }
  0x2f   : > { %160 = sbr.rel (%p157_p3) target bundleno = 201 (0xc9), region = 32  ;;  %s163_s9 = scalar_lea.sflag (!%p157_p3), [#allocation3], %s698_s5 }
  0x30   : > { %s395_s8 = smul.u32 (!%p157_p3), 48, %s698_s5 }
  0x32   : > { %s166_s10 = scalar_lea.vmem (!%p157_p3), [#allocation2], %s395_s8 }
  0x34   : > { %557 = dma.done.wait (%p800_p6), %s163_s9, 768  }
  0x35   : > { %559 = vsyncadd (%p800_p6), %s163_s9, 4294966528  ;;  %v583_v0 = vmov 0   ;;  %v254_v1 = vld [vmem:[%s791_s1] sm:$0xff]  ;;  %v256_v2 = vld [vmem:[%s791_s1 + $0x10] sm:$0xff]  ;;  %v243_v34 = vlaneseq  ;;  %s188_s26 = scalar_lea.vmem [#allocation5], %s395_s8  ;;  %s396_s28 = smul.u32 768, %s628_s16 }
  0x36   : > { %448 = vset.pattern.permute.xlu0 %v583_v0  ;;  %449 = vset.pattern.permute.xlu1 %v583_v0  ;;  %v255_v3 = vld [vmem:[%s791_s1 + $0x8] sm:$0xff]  ;;  %v189_v4 = vld [vmem:[%s166_s10] sm:$0xff]  ;;  %v191_v12 = vld [vmem:[%s166_s10 + $0x10] sm:$0xff]  ;;  %s306_s27 = sshll.u32 %s188_s26, 4  ;;  %s293_s16 = scalar_lea.sflag [#allocation4], %s698_s5  ;;  %s742_s27 = int_to_ptr.vmem [resolvable:$true] %s306_s27 }
  0x37   : > { %259 = vperm.xlu0 %448, %v254_v1   ;;  %269 = vperm.xlu1 %449, %v256_v2   ;;  %v190_v5 = vld [vmem:[%s166_s10 + $0x8] sm:$0xff]  ;;  %v193_v6 = vld [vmem:[%s166_s10 + $0x20] sm:$0xff]  ;;  %v384_v7 = vmul.f32 -1.442695, %v189_v4  ;;  %v192_v13 = vld [vmem:[%s166_s10 + $0x18] sm:$0xff]  ;;  %v244_v36 = vshrl.u32 %v243_v34, 7  ;;  %s747_s9 = scalar_lea.hbm %s793_s3, %s396_s28 }
  0x38   : > { %v194_v8 = vld [vmem:[%s166_s10 + $0x28] sm:$0xff]  ;;  %v385_v9 = vmul.f32 -1.442695, %v190_v5  ;;  %v388_v10 = vmul.f32 -1.442695, %v193_v6  ;;  %v278_v53 = vld [vmem:[%s790_s0] sm:$0xff] }
  0x39   : > { %v389_v11 = vmul.f32 -1.442695, %v194_v8  ;;  %450 = vpow2.f32 %v384_v7  ;;  %v386_v14 = vmul.f32 -1.442695, %v191_v12  ;;  %v387_v15 = vmul.f32 -1.442695, %v192_v13 }
  0x3a   : > { %452 = vpow2.f32 %v385_v9  ;;  %v231_v16 = vmul.f32 1.442695, %v189_v4  ;;  %v233_v18 = vmul.f32 1.442695, %v190_v5  ;;  %v239_v20 = vmul.f32 1.442695, %v193_v6 }
  0x3b   : > { %264 = vperm.xlu0 %448, %v255_v3   ;;  %454 = vpow2.f32 %v388_v10  ;;  %v241_v22 = vmul.f32 1.442695, %v194_v8  ;;  %v235_v30 = vmul.f32 1.442695, %v191_v12  ;;  %v237_v31 = vmul.f32 1.442695, %v192_v13 }
  0x3c   : > { %456 = vpow2.f32 %v389_v11  ;;  %vm245_vm0 = vcmp.ge.s32.totalorder %v244_v36, 2  ;;  %vm246_vm1 = vcmp.lt.s32.totalorder %v244_v36, 4  ;;  %v279_v54 = vld [vmem:[%s790_s0 + $0x8] sm:$0xff]  ;;  %s514_s10 = scalar_lea.vmem %s742_s27, 768  ;;  %p803_p12 = scmp.ne.s32.totalorder %s797_s23, 0 }
  0x3d   : > { %458 = vpow2.f32 %v386_v14  ;;  %vm717_vm2 = vmand %vm245_vm0, %vm246_vm1  ;;  %p515_p11 = scmp.ne.s32.totalorder %s742_s27, %s514_s10  ;;  %s584_s30 = smov [#allocation5]  }
  0x3e   : > { %460 = vpow2.f32 %v387_v15  ;;  %s518_s4 = sshll.u32 %s584_s30, 4  ;;  %s519_s4 = int_to_ptr.vmem [resolvable:$false] %s518_s4 }
  0x3f   : > { %462 = vpow2.f32 %v231_v16  ;;  %p516_p13 = pnand %p515_p11, %p803_p12  ;;  %s520_s6 = scalar_lea.vmem %s519_s4, 1536 }
  0x40   : > { %464 = vpow2.f32 %v233_v18  ;;  %p521_p5 = scmp.lt.s32.totalorder %s742_s27, %s519_s4  ;;  %p522_p7 = scmp.lt.s32.totalorder %s520_s6, %s514_s10 }
  0x41   : > { %466 = vpow2.f32 %v239_v20  ;;  %p517_p4 = pneg %p516_p13 }
  0x42   : > { %468 = vpow2.f32 %v241_v22  ;;  %p523_p8 = por %p522_p7, %p521_p5 }
  0x44   : > { %p524_p10 = pnand %p523_p8, %p517_p4 }
  0x46   : > { %v451_v17 = vpop.eup %450 }
  0x47   : > { %v453_v19 = vpop.eup %452  ;;  %v213_v24 = vadd.f32 1.0, %v451_v17 }
  0x48   : > { %v455_v21 = vpop.eup %454  ;;  %v214_v25 = vadd.f32 1.0, %v453_v19 }
  0x49   : > { %v457_v23 = vpop.eup %456  ;;  %v217_v26 = vadd.f32 1.0, %v455_v21  ;;  %470 = vrcp.f32 %v213_v24 }
  0x4a   : > { %v459_v27 = vpop.eup %458  ;;  %v218_v28 = vadd.f32 1.0, %v457_v23  ;;  %472 = vrcp.f32 %v214_v25 }
  0x4b   : > { %v461_v29 = vpop.eup %460  ;;  %474 = vrcp.f32 %v217_v26  ;;  %v215_v32 = vadd.f32 1.0, %v459_v27 }
  0x4c   : > { %476 = vrcp.f32 %v218_v28  ;;  %v216_v33 = vadd.f32 1.0, %v461_v29  ;;  %v463_v35 = vpop.eup %462 }
  0x4d   : > { %478 = vpow2.f32 %v235_v30  ;;  %v465_v37 = vpop.eup %464 }
  0x4e   : > { %480 = vpow2.f32 %v237_v31  ;;  %v467_v38 = vpop.eup %466 }
  0x4f   : > { %482 = vrcp.f32 %v215_v32  ;;  %v469_v39 = vpop.eup %468 }
  0x50   : > { %484 = vrcp.f32 %v216_v33 }
  0x56   : > { %v471_v40 = vpop.eup %470 }
  0x57   : > { %v473_v41 = vpop.eup %472  ;;  %v248_v48 = vsel %vm717_vm2, %v463_v35, %v471_v40 }
  0x58   : > { %v475_v42 = vpop.eup %474  ;;  %v249_v49 = vsel %vm717_vm2, %v465_v37, %v473_v41 }
  0x59   : > { %v477_v43 = vpop.eup %476  ;;  %v252_v50 = vsel %vm717_vm2, %v467_v38, %v475_v42 }
  0x5a   : > { %v479_v45 = vpop.eup %478  ;;  %v253_v51 = vsel %vm717_vm2, %v469_v39, %v477_v43 }
  0x5b   : > { %v481_v46 = vpop.eup %480 }
  0x5c   : > { %v483_v47 = vpop.eup %482 }
  0x5d   : > { %v485_v52 = vpop.eup %484  ;;  %v250_v61 = vsel %vm717_vm2, %v479_v45, %v483_v47 }
  0x5e   : > { %v251_v62 = vsel %vm717_vm2, %v481_v46, %v485_v52 }
  0xb2   : > { %v260_v55 = vpop.permute.xlu0 %259  ;;  %v270_v56 = vpop.permute.xlu1 %269 }
  0xb3   : > { %v272_v57 = vmul.f32 %v260_v55, %v248_v48  ;;  %v273_v58 = vmul.f32 %v260_v55, %v249_v49  ;;  %v276_v59 = vmul.f32 %v270_v56, %v252_v50  ;;  %v277_v60 = vmul.f32 %v270_v56, %v253_v51 }
  0xb5   : > { %v280_v63 = vadd.f32 %v278_v53, %v272_v57  ;;  %v281_v0 = vadd.f32 %v279_v54, %v273_v58  ;;  %v284_v1 = vadd.f32 %v278_v53, %v276_v59  ;;  %v285_v2 = vadd.f32 %v279_v54, %v277_v60 }
  0xb6   : > { %v265_v3 = vpop.permute.xlu0 %264 }
  0xb7   : > { %286 = vst [vmem:[%s188_s26] sm:$0xff] %v280_v63  ;;  %287 = vst [vmem:[%s188_s26 + $0x8] sm:$0xff] %v281_v0  ;;  %v274_v4 = vmul.f32 %v265_v3, %v250_v61  ;;  %v275_v5 = vmul.f32 %v265_v3, %v251_v62 }
  0xb8   : > { %290 = vst [vmem:[%s188_s26 + $0x20] sm:$0xff] %v284_v1  ;;  %291 = vst [vmem:[%s188_s26 + $0x28] sm:$0xff] %v285_v2 }
  0xb9   : > { %v282_v6 = vadd.f32 %v278_v53, %v274_v4  ;;  %v283_v7 = vadd.f32 %v279_v54, %v275_v5 }
  0xbb   : > { %288 = vst [vmem:[%s188_s26 + $0x10] sm:$0xff] %v282_v6  ;;  %289 = vst [vmem:[%s188_s26 + $0x18] sm:$0xff] %v283_v7 }
  0xbc   : > { %527 = shalt.err (!%p524_p10)
}
  0xbd   : > { %s528_s7 = scalar_lea.hbm %s747_s9, 768  ;;  %s532_s22 = scalar_lea.hbm %s793_s3, 1536 }
  0xbe   : > { %p529_p0 = scmp.ne.s32.totalorder %s747_s9, %s528_s7  ;;  %p533_p1 = scmp.lt.s32.totalorder %s747_s9, %s793_s3 }
  0xbf   : > { %p534_p3 = scmp.lt.s32.totalorder %s532_s22, %s528_s7 }
  0xc0   : > { %p530_p2 = pnand %p529_p0, %p803_p12 }
  0xc1   : > { %p535_p6 = por %p534_p3, %p533_p1 }
  0xc2   : > { %p531_p9 = pneg %p530_p2 }
  0xc4   : > { %p536_p11 = pnand %p535_p6, %p531_p9 }
  0xc6   : > { %539 = shalt.err (!%p536_p11)
}
  0xc7   : > { %s585_s25 = smov 256   ;;  %s586_s26 = smov 16  }
  0xc8   : > { %399 = dma.vmem_to_hbm [thread:$0]  (%p803_p12), %s742_s27, 768, %s747_s9, %s293_s16, %s585_s25, %s585_s25, %s586_s26  }
  0xc9 PF: > { %s321_s28 = sand.u32 1, %s566_s12   ;;  %p804_p13 = scmp.ne.s32.totalorder %s798_s24, 0 }
  0xca   : > { %p805_p4 = scmp.ge.s32.totalorder %s578_s15, 2  ;;  %s322_s29 = scalar_lea.sflag [#allocation4], %s321_s28 }
  0xcc   : > { %p406_p5 = pnand %p805_p4, %p804_p13 }
  0xce   : > { %p407_p7 = pneg %p406_p5 }
  0xd0   : > { %561 = dma.done.wait (%p407_p7), %s322_s29, 768  }
  0xd1   : > { %563 = vsyncadd (%p407_p7), %s322_s29, 4294966528  ;;  %p16_p8 = scmp.ge.s32.totalorder %s632_s18, 4   ;;  %s806_s12 = smov %s570_s13 }
  0xd2   : > { %s807_s13 = smov %s574_s14  ;;  %s808_s14 = smov %s644_s21 }
  0xd3   : > { %s809_s15 = smov %s632_s18  ;;  %18 = sbr.rel (!%p16_p8) target bundleno = 5 (0x5), region = 77 }
  0xd8   :  { %327 = vsyncpa [#allocation3], 1 }
  0xd9   :  { %329 = vsyncpa [#allocation3 + $0x1], 1 }
  0xda   :  { %330 = vsyncpa [#allocation4], 1 }
  0xdb   :  { %332 = vsyncpa [#allocation4 + $0x1], 1 }

</bundles_post_ra>
